<compile_context>
chip_gen: v7x
topology: tpu7x:2x2x1
jax: 0.10.0
libtpu: 0.0.40
codegen_flags: <defaults>
</compile_context>

<pallas_src>
import math

import jax
import jax.numpy as jnp
from jax.experimental import pallas as pl
from jax.experimental.pallas import tpu as pltpu


def _pe_add_kernel(x_ref, pe_ref, o_ref):
    # x_ref / o_ref: (tl, B*D) lane-dense slab.  pe_ref: (tl, D) fp32.
    d = pe_ref.shape[1]
    reps = x_ref.shape[1] // d           # static batch replication factor
    pe_f32 = pe_ref[...].astype(jnp.float32)  # resident in a handful of vregs
    for r in range(reps):                # static unroll; static slices are free
        lo, hi = r * d, (r + 1) * d
        o_ref[:, lo:hi] = (
            x_ref[:, lo:hi].astype(jnp.float32) + pe_f32
        ).astype(o_ref.dtype)


def make_positional_encoding(model_dim: int, max_len: int) -> jnp.ndarray:
    """Deterministic buffer construction (matches the PyTorch __init__)."""
    pos = jnp.arange(0, max_len, dtype=jnp.float32)[:, None]              # (max_len, 1)
    term = jnp.exp(
        jnp.arange(0, model_dim, 2, dtype=jnp.float32)
        * -(math.log(10000.0) / model_dim)
    )
    pe = jnp.zeros((max_len, model_dim), dtype=jnp.float32)
    pe = pe.at[:, 0::2].set(jnp.sin(pos * term))
    # Slice term for the cos half so odd model_dim does not shape-mismatch.
    pe = pe.at[:, 1::2].set(jnp.cos(pos * term[: model_dim // 2]))
    return pe                                                              # (max_len, D), fp32


def _round_up(n: int, m: int) -> int:
    return -(-n // m) * m


def _gen_params() -> tuple[int, int]:
    """(target block bytes, vmem_limit_bytes) per TPU generation."""
    kind = ""
    try:
        kind = jax.devices()[0].device_kind.lower()
    except Exception:
        pass
    if "v5" in kind:
        return 3 << 20, 32 << 20     # v5e: ~820 GB/s HBM; modest blocks, bump scoped VMEM
    if "v7" in kind:
        return 7 << 20, 48 << 20     # v7x: fast HBM, only 64 MiB physical VMEM
    return 6 << 20, 64 << 20         # v6e / unknown: lots of VMEM headroom


def _choose_seq_tile(seq_len: int, row_bytes: int, itemsize: int, target_bytes: int) -> int:
    """Seq tile: ~target_bytes per x-block, rounded to the sublane-pack granularity."""
    gran = max(8, 32 // max(itemsize, 1))        # 8 fp32, 16 bf16, 32 int8/fp8
    tl = max(gran, (target_bytes // max(row_bytes, 1)) // gran * gran)
    if tl >= seq_len:
        if seq_len > gran:
            # Prefer >= 2 grid blocks so both v7x TensorCores get work.
            tl = _round_up(pl.cdiv(seq_len, 2), gran)
        else:
            tl = _round_up(seq_len, gran)        # can't split below pack granularity
    return tl


def positional_encoding_forward(x: jnp.ndarray, pe: jnp.ndarray) -> jnp.ndarray:
    """x: (L, B, D); pe: (max_len, D) fp32.  Returns x + pe[:L] broadcast over batch."""
    L, B, D = x.shape
    assert pe.shape[0] >= L and pe.shape[1] == D
    x2 = x.reshape(L, B * D)                     # lane-dense 2-D view (zero-copy)

    itemsize = jnp.dtype(x.dtype).itemsize
    target_bytes, vmem_limit = _gen_params()
    tl = _choose_seq_tile(L, B * D * itemsize, itemsize, target_bytes)
    grid = (pl.cdiv(L, tl),)

    out2 = pl.pallas_call(
        _pe_add_kernel,
        out_shape=jax.ShapeDtypeStruct((L, B * D), x.dtype),
        grid_spec=pl.GridSpec(
            grid=grid,
            in_specs=[
                pl.BlockSpec((tl, B * D), lambda i: (i, 0)),
                # Full pe buffer in HBM; the index_map does the pe[:L] slicing,
                # so only L*D (not L*B*D) of pe traffic and no per-call cast op.
                pl.BlockSpec((tl, D), lambda i: (i, 0)),
            ],
            out_specs=pl.BlockSpec((tl, B * D), lambda i: (i, 0)),
        ),
        compiler_params=pltpu.CompilerParams(
            dimension_semantics=("parallel",),
            vmem_limit_bytes=vmem_limit,
        ),
    )(x2, pe)
    return out2.reshape(L, B, D)


if __name__ == "__main__":
    # Small shapes consistent with the module's forward: (seq, batch, model_dim)
    seq_len, batch, model_dim, max_len = 8, 2, 32, 16

    key = jax.random.PRNGKey(0)
    x = jax.random.normal(key, (seq_len, batch, model_dim), dtype=jnp.float32)
    pe = make_positional_encoding(model_dim, max_len)

    out = jax.block_until_ready(positional_encoding_forward(x, pe))
    ref = x + pe[:seq_len][:, None, :]
    assert out.shape == (seq_len, batch, model_dim)
    assert jnp.allclose(out, ref, atol=1e-6, rtol=1e-6)

    # Second check: L not a multiple of the seq tile -> multi-block grid with an
    # edge-masked last block (locks in the padded-row handling).
    seq2 = 12
    x2 = jax.random.normal(jax.random.PRNGKey(1), (seq2, batch, model_dim), dtype=jnp.float32)
    out2 = jax.block_until_ready(positional_encoding_forward(x2, pe))
    ref2 = x2 + pe[:seq2][:, None, :]
    assert jnp.allclose(out2, ref2, atol=1e-6, rtol=1e-6)

    print("KERNEL_OK")
</pallas_src>

<mosaic_0001>
module attributes {stable_mosaic.version = 11 : i64} {
  func.func @_pe_add_kernel(%arg0: i32, %arg1: memref<8x64xf32, #tpu.memory_space<vmem>>, %arg2: memref<8x32xf32, #tpu.memory_space<vmem>>, %arg3: memref<8x64xf32, #tpu.memory_space<vmem>>) attributes {dimension_semantics = [#tpu.dimension_semantics<parallel>], iteration_bounds = array<i64: 1>, scalar_prefetch = 0 : i64, scratch_operands = 0 : i64, tpu.core_type = #tpu.core_type<tc>, window_params = [{transform_indices = @transform_0, window_bounds = array<i64: 8, 64>}, {transform_indices = @transform_1, window_bounds = array<i64: 8, 32>}, {transform_indices = @transform_2, window_bounds = array<i64: 8, 64>}]} {
    %c0 = arith.constant 0 : index
    %c0_0 = arith.constant 0 : index
    %0 = vector.load %arg2[%c0, %c0_0] : memref<8x32xf32, #tpu.memory_space<vmem>>, vector<8x32xf32>
    %c0_1 = arith.constant 0 : index
    %c0_2 = arith.constant 0 : index
    %1 = vector.load %arg1[%c0_1, %c0_2] : memref<8x64xf32, #tpu.memory_space<vmem>>, vector<8x32xf32>
    %2 = arith.addf %1, %0 : vector<8x32xf32>
    %c0_3 = arith.constant 0 : index
    %c0_4 = arith.constant 0 : index
    %3 = vector.load %arg3[%c0_3, %c0_4] : memref<8x64xf32, #tpu.memory_space<vmem>>, vector<8x32xf32>
    tpu.vector_store %arg3[%c0_3, %c0_4], %2 {strides = array<i32>} : memref<8x64xf32, #tpu.memory_space<vmem>>, vector<8x32xf32>,
    %c0_5 = arith.constant 0 : index
    %c32 = arith.constant 32 : index
    %4 = vector.load %arg1[%c0_5, %c32] : memref<8x64xf32, #tpu.memory_space<vmem>>, vector<8x32xf32>
    %5 = arith.addf %4, %0 : vector<8x32xf32>
    %c0_6 = arith.constant 0 : index
    %c32_7 = arith.constant 32 : index
    %6 = vector.load %arg3[%c0_6, %c32_7] : memref<8x64xf32, #tpu.memory_space<vmem>>, vector<8x32xf32>
    tpu.vector_store %arg3[%c0_6, %c32_7], %5 {strides = array<i32>} : memref<8x64xf32, #tpu.memory_space<vmem>>, vector<8x32xf32>,
    return
  }
  func.func @transform_0(%arg0: i32) -> (i32, i32) {
    %c0_i32 = arith.constant 0 : i32
    %c0_i32_0 = arith.constant 0 : i32
    return %arg0, %c0_i32 : i32, i32
  }
  func.func @transform_1(%arg0: i32) -> (i32, i32) {
    %c0_i32 = arith.constant 0 : i32
    %c0_i32_0 = arith.constant 0 : i32
    return %arg0, %c0_i32 : i32, i32
  }
  func.func @transform_2(%arg0: i32) -> (i32, i32) {
    %c0_i32 = arith.constant 0 : i32
    %c0_i32_0 = arith.constant 0 : i32
    return %arg0, %c0_i32 : i32, i32
  }
}

</mosaic_0001>

<bundles_post_ra>
// kernel: tpu_custom_call.1
= control target key start
LH: loop header
LB: loop body
LE: loop exit
PB: predicated region body
PF: predicated region fallthrough
CT: control target
= control target key end

     0   :  { %7 = vsyncpa [#allocation3], 0  ;;  %s206_s0 = inlined_call_operand.hbm [shape: f32[8,64], index: 0, kind: input, shape index: {}]   ;;  %s207_s1 = inlined_call_operand.hbm [shape: f32[16,32], index: 1, kind: input, shape index: {}]   ;;  %s208_s2 = inlined_call_operand.hbm [shape: f32[8,64], index: 2, kind: output, shape index: {}]  }
   0x1   :  { %8 = vsyncpa [#allocation6], 0 }
   0x2   :  { %9 = vsyncpa [#allocation4], 0  ;;  %s141_s9 = smov [#allocation2]   ;;  %s142_s11 = smov [#allocation5]  }
   0x3   :  { %s16_s10 = sshll.u32 %s141_s9, 4  ;;  %s26_s12 = sshll.u32 %s142_s11, 4  ;;  %s17_s10 = int_to_ptr.vmem [resolvable:$true] %s16_s10  ;;  %s160_s12 = int_to_ptr.vmem [resolvable:$true] %s26_s12 }
   0x4   :  { %s69_s15 = scalar_lea.hbm %s206_s0, 128 }
   0x5   :  { %p70_p0 = scmp.ne.s32.totalorder %s206_s0, %s69_s15  ;;  %p73_p1 = scmp.lt.u32.totalorder %s69_s15, %s206_s0 }
   0x7   :  { %p75_p2 = pnand %p73_p1, %p70_p0 }
   0x9   :  { %78 = shalt.err (!%p75_p2)
}
   0xa   :  { %s79_s20 = scalar_lea.vmem %s17_s10, 128  ;;  %p84_p4 = scmp.lt.s32.totalorder %s17_s10, %s17_s10 }
   0xb   :  { %p80_p3 = scmp.ne.s32.totalorder %s17_s10, %s79_s20  ;;  %p85_p5 = scmp.lt.s32.totalorder %s79_s20, %s79_s20 }
   0xd   :  { %p86_p6 = por %p85_p5, %p84_p4 }
   0xf   :  { %p87_p7 = pnand %p86_p6, %p80_p3 }
  0x11   :  { %90 = shalt.err (!%p87_p7)
}
  0x12   :  { %19 = dma.hbm_to_vmem [thread:$0]  %s206_s0, 128, %s17_s10, [#allocation3]  }
  0x13   :  { %s91_s25 = scalar_lea.hbm %s207_s1, 128  ;;  %s93_s30 = scalar_lea.hbm %s207_s1, 256 }
  0x14   :  { %p92_p8 = scmp.ne.s32.totalorder %s207_s1, %s91_s25  ;;  %p94_p9 = scmp.lt.u32.totalorder %s93_s30, %s91_s25 }
  0x15   :  { %p95_p10 = scmp.lt.u32.totalorder %s91_s25, %s207_s1 }
  0x17   :  { %p96_p11 = por %p95_p10, %p94_p9 }
  0x19   :  { %p97_p12 = pnand %p96_p11, %p92_p8 }
  0x1b   :  { %100 = shalt.err (!%p97_p12)
}
  0x1c   :  { %s101_s0 = scalar_lea.vmem %s160_s12, 128  ;;  %p106_p0 = scmp.lt.s32.totalorder %s160_s12, %s160_s12 }
  0x1d   :  { %p102_p13 = scmp.ne.s32.totalorder %s160_s12, %s101_s0  ;;  %p107_p1 = scmp.lt.s32.totalorder %s101_s0, %s101_s0 }
  0x1f   :  { %p108_p2 = por %p107_p1, %p106_p0 }
  0x21   :  { %p109_p3 = pnand %p108_p2, %p102_p13 }
  0x23   :  { %112 = shalt.err (!%p109_p3)
}
  0x24   :  { %29 = dma.hbm_to_vmem [thread:$0]  %s207_s1, 128, %s160_s12, [#allocation6]  }
  0x25   :  { %135 = dma.done.wait [#allocation3], 128  }
  0x26   :  { %136 = vsyncadd [#allocation3], 4294967168 }
  0x27   :  { %137 = dma.done.wait [#allocation6], 128  }
  0x28   :  { %138 = vsyncadd [#allocation6], 4294967168  ;;  %v36_v0 = vld [vmem:[#allocation5] sm:$0xff]  ;;  %v37_v1 = vld [vmem:[#allocation2] sm:$0xff]  ;;  %vm39_vm0 = vcmask 261120   ;;  %s143_s7 = smov 32  }
  0x29   :  { %v38_v2 = vadd.f32 %v37_v1, %v36_v0  ;;  %43 = vrot.lane.b32.xlu0 %v36_v0, %s143_s7  ;;  %s144_s8 = smov [#allocation7]   ;;  %vm47_vm1 = vcmask 523520  }
  0x2a   :  { %s55_s9 = sshll.u32 %s144_s8, 4  ;;  %s56_s9 = int_to_ptr.vmem [resolvable:$true] %s55_s9 }
  0x2b   :  { %40 = vst.msk [vmem:[#allocation7] sm:$0xff] %vm39_vm0, %v38_v2  ;;  %s113_s10 = scalar_lea.vmem %s56_s9, 128  ;;  %p118_p5 = scmp.lt.s32.totalorder %s56_s9, %s56_s9 }
  0x2c   :  { %p114_p4 = scmp.ne.s32.totalorder %s56_s9, %s113_s10  ;;  %p119_p6 = scmp.lt.s32.totalorder %s113_s10, %s113_s10 }
  0x2e   :  { %p120_p7 = por %p119_p6, %p118_p5 }
  0x30   :  { %p121_p8 = pnand %p120_p7, %p114_p4 }
  0x9b   :  { %v44_v3 = vpop.permute.xlu0 %43 }
  0x9c   :  { %v46_v4 = vadd.f32 %v44_v3, %v37_v1 }
  0x9e   :  { %48 = vst.msk [vmem:[#allocation7] sm:$0xff] %vm47_vm1, %v46_v4 }
  0x9f   :  { %124 = shalt.err (!%p121_p8)
}
  0xa0   :  { %s125_s12 = scalar_lea.hbm %s208_s2, 128 }
  0xa1   :  { %p126_p9 = scmp.ne.s32.totalorder %s208_s2, %s125_s12  ;;  %p129_p10 = scmp.lt.u32.totalorder %s125_s12, %s208_s2 }
  0xa3   :  { %p131_p11 = pnand %p129_p10, %p126_p9 }
  0xa5   :  { %134 = shalt.err (!%p131_p11)
}
  0xa6   :  { %58 = dma.vmem_to_hbm [thread:$0]  %s56_s9, 128, %s208_s2, [#allocation4]  }
  0xa7   :  { %139 = dma.done.wait [#allocation4], 128  }
  0xa8   :  { %140 = vsyncadd [#allocation4], 4294967168 }
  0xa9   :  { %62 = vsyncpa [#allocation3], 1 }
  0xaa   :  { %63 = vsyncpa [#allocation6], 1 }
  0xab   :  { %64 = vsyncpa [#allocation4], 1 }

</bundles_post_ra>
